<compile_context>
chip_gen: v7x
topology: tpu7x:2x2x1
jax: 0.10.0
libtpu: 0.0.40
codegen_flags: <defaults>
</compile_context>

<pallas_src>
import functools
import math

import jax
import jax.numpy as jnp
from jax.experimental import pallas as pl
from jax.experimental.pallas import tpu as pltpu

_MIB = 1024 * 1024


def _round_up(x, m):
    return ((x + m - 1) // m) * m


# --------------------------------------------------------------------------
# Kernel
# --------------------------------------------------------------------------
def _cll_dense_chunk_kernel(x_ref, e0_init_ref, e1_init_ref, wt_ref, b_ref,
                            spk_ref, pv_ref, vmem_ref, e0_ref, e1_ref,
                            eps1_buf,
                            *, tau_s__dt, alphas, alpha, tau_m__dt,
                            tc, tb, t_total, mask_time):
    """One (batch_tile i, time_chunk c) grid point.

    e0_ref / e1_ref are output blocks whose block index is constant along the
    time-chunk axis, so Pallas keeps them resident in VMEM across all chunks of
    a batch tile -> they double as the recurrent state carry.

    The Tc-step recurrence is pure VPU work; eps1 rows are staged (bf16) in
    `eps1_buf`, then a single [Tc*TB, Cin_p] @ [Cin_p, Cout_p] MXU matmul
    produces the whole chunk's membrane potentials at once.
    """
    c = pl.program_id(1)

    @pl.when(c == 0)
    def _():
        e0_ref[...] = e0_init_ref[...]
        e1_ref[...] = e1_init_ref[...]

    e0 = e0_ref[...]                                   # [tb, Cin_p] f32
    e1 = e1_ref[...]
    for s in range(tc):                                # small static trip count
        x_t = x_ref[s].astype(jnp.float32)             # bf16 HBM stream -> f32
        e0n = x_t * tau_s__dt + alphas * e0
        e1n = alpha * e1 + e0n * tau_m__dt
        if mask_time:                                  # only if T % Tc != 0
            valid = (c * tc + s) < t_total
            e0n = jnp.where(valid, e0n, e0)
            e1n = jnp.where(valid, e1n, e1)
        eps1_buf[s * tb:(s + 1) * tb, :] = e1n.astype(jnp.bfloat16)
        e0, e1 = e0n, e1n
    e0_ref[...] = e0
    e1_ref[...] = e1

    # One big MXU matmul for the whole chunk (bf16 operands, f32 accumulation).
    acc = jnp.dot(eps1_buf[...], wt_ref[...],
                  preferred_element_type=jnp.float32)  # [tc*tb, Cout_p]
    v = acc + b_ref[...]                               # bias broadcast
    v3 = v.reshape(tc, tb, v.shape[-1])

    vmem_ref[...] = v3.astype(vmem_ref.dtype)
    pv_ref[...] = jax.nn.sigmoid(v3).astype(pv_ref.dtype)
    spk_ref[...] = (v3 > 0.0).astype(spk_ref.dtype)


# --------------------------------------------------------------------------
# One-time per-layer parameter prep
# --------------------------------------------------------------------------
def prepare_cll_dense_params(weight, bias):
    """Transpose, pad to 128-lane tiles, cast weight to bf16 (call once per layer).

    weight: [Cout, Cin] (PyTorch F.linear convention), bias: [Cout].
    Returns (wt_p [Cin_p, Cout_p] bf16, bias_p [1, Cout_p] f32, Cout).
    """
    cout, cin = weight.shape
    cin_p = _round_up(int(cin), 128)
    cout_p = _round_up(int(cout), 128)
    wt_p = jnp.zeros((cin_p, cout_p), jnp.bfloat16)
    wt_p = wt_p.at[:cin, :cout].set(weight.T.astype(jnp.bfloat16))
    bias_p = jnp.zeros((1, cout_p), jnp.float32)
    bias_p = bias_p.at[0, :cout].set(bias.astype(jnp.float32))
    return wt_p, bias_p, int(cout)


# --------------------------------------------------------------------------
# VMEM-budgeted tiling
# --------------------------------------------------------------------------
def _vmem_capacity_bytes():
    try:
        return int(pltpu.get_tpu_info().vmem_capacity_bytes)
    except Exception:
        return 64 * _MIB        # conservative (v7x per-core size)


def _est_vmem_bytes(tb, tc, cin_p, cout_p):
    """Working-set estimate; double buffering already included where it applies."""
    x_in = 2 * tc * tb * cin_p * 2                  # bf16 x blocks, 2 buffers
    state = 4 * 2 * tb * cin_p * 4                  # eps0/eps1 init + carry, f32
    outs = 2 * tc * tb * cout_p * (2 + 2 + 4)       # spk/pv bf16 + vmem f32
    scr = tc * tb * cin_p * 2                       # eps1 bf16 staging scratch
    w = 2 * cin_p * cout_p * 2 + 2 * cout_p * 4     # resident bf16 weight + bias
    live = 2 * tc * tb * cout_p * 4                 # acc / v f32 temporaries
    return x_in + state + outs + scr + w + live


def _choose_tiles(t, b16, cin_p, cout_p, budget, max_time_chunk):
    """Pick (batch_tile, time_chunk); tb multiple of 16, Tc*TB targets >=256 MXU rows."""
    tb = min(b16, 256)
    # v7x megacore: the batch-tile axis is "parallel"; make sure there are at
    # least two tiles when the batch allows it so both TensorCores get work.
    if b16 // tb == 1 and b16 >= 32 and b16 % 32 == 0:
        tb = b16 // 2
    tc_cap = max_time_chunk if max_time_chunk is not None else 32
    tc = max(1, min(t, tc_cap, max(1, 512 // tb)))
    while tc > 1 and _est_vmem_bytes(tb, tc, cin_p, cout_p) > budget:
        tc = max(1, tc // 2)
    while tb > 16 and _est_vmem_bytes(tb, tc, cin_p, cout_p) > budget:
        tb = max(16, (tb // 2) // 16 * 16)
    return tb, tc


# --------------------------------------------------------------------------
# Jitted implementation (padding / casts fused with the kernel call)
# --------------------------------------------------------------------------
@functools.partial(jax.jit, static_argnames=(
    "alpha", "alphas", "cout", "tb", "tc", "t_p", "b_p",
    "spike_dtype", "pv_dtype", "vmem_limit"))
def _cll_dense_impl(x_seq, eps0, eps1, wt_p, bias_p, *, alpha, alphas, cout,
                    tb, tc, t_p, b_p, spike_dtype, pv_dtype, vmem_limit):
    T, B, Cin = x_seq.shape
    Cin_p, Cout_p = wt_p.shape

    tau_m__dt = 1.0 / (1.0 - alpha)
    tau_s__dt = 1.0 / (1.0 - alphas)

    # x streamed as bf16 (spike inputs 0/1 are exact); pad only when needed.
    x_p = x_seq.astype(jnp.bfloat16)
    if (t_p, b_p, Cin_p) != (T, B, Cin):
        x_p = jnp.pad(x_p, ((0, t_p - T), (0, b_p - B), (0, Cin_p - Cin)))
    e0_p = eps0.astype(jnp.float32)
    e1_p = eps1.astype(jnp.float32)
    if (b_p, Cin_p) != (B, Cin):
        pad2 = ((0, b_p - B), (0, Cin_p - Cin))
        e0_p = jnp.pad(e0_p, pad2)
        e1_p = jnp.pad(e1_p, pad2)

    nb = b_p // tb
    n_tc = t_p // tc

    kernel = functools.partial(
        _cll_dense_chunk_kernel,
        tau_s__dt=tau_s__dt, alphas=alphas, alpha=alpha, tau_m__dt=tau_m__dt,
        tc=tc, tb=tb, t_total=T, mask_time=(t_p != T))

    in_specs = [
        pl.BlockSpec((tc, tb, Cin_p), lambda i, c: (c, i, 0)),   # x (bf16)
        pl.BlockSpec((tb, Cin_p), lambda i, c: (i, 0)),          # eps0 init
        pl.BlockSpec((tb, Cin_p), lambda i, c: (i, 0)),          # eps1 init
        pl.BlockSpec((Cin_p, Cout_p), lambda i, c: (0, 0)),      # weight (resident)
        pl.BlockSpec((1, Cout_p), lambda i, c: (0, 0)),          # bias (resident)
    ]
    out_specs = (
        pl.BlockSpec((tc, tb, Cout_p), lambda i, c: (c, i, 0)),  # spikes
        pl.BlockSpec((tc, tb, Cout_p), lambda i, c: (c, i, 0)),  # pv
        pl.BlockSpec((tc, tb, Cout_p), lambda i, c: (c, i, 0)),  # vmem
        pl.BlockSpec((tb, Cin_p), lambda i, c: (i, 0)),          # eps0 carry/final
        pl.BlockSpec((tb, Cin_p), lambda i, c: (i, 0)),          # eps1 carry/final
    )
    out_shapes = (
        jax.ShapeDtypeStruct((t_p, b_p, Cout_p), spike_dtype),
        jax.ShapeDtypeStruct((t_p, b_p, Cout_p), pv_dtype),
        jax.ShapeDtypeStruct((t_p, b_p, Cout_p), jnp.float32),
        jax.ShapeDtypeStruct((b_p, Cin_p), jnp.float32),
        jax.ShapeDtypeStruct((b_p, Cin_p), jnp.float32),
    )

    compiler_params = pltpu.CompilerParams(
        dimension_semantics=("parallel", "arbitrary"),   # batch || cores, time = carry
        vmem_limit_bytes=vmem_limit)

    spk, pv, vmem, e0_new, e1_new = pl.pallas_call(
        kernel,
        grid=(nb, n_tc),
        in_specs=in_specs,
        out_specs=out_specs,
        out_shape=out_shapes,
        scratch_shapes=[pltpu.VMEM((tc * tb, Cin_p), jnp.bfloat16)],
        compiler_params=compiler_params,
        input_output_aliases={1: 3, 2: 4},   # eps0/eps1 updated "in place"
    )(x_p, e0_p, e1_p, wt_p, bias_p)

    # Strip padding only when padding was actually added.
    if (t_p, b_p, Cout_p) != (T, B, cout):
        spk = spk[:T, :B, :cout]
        pv = pv[:T, :B, :cout]
        vmem = vmem[:T, :B, :cout]
    if (b_p, Cin_p) != (B, Cin):
        e0_new = e0_new[:B, :Cin]
        e1_new = e1_new[:B, :Cin]
    return spk, pv, vmem, e0_new, e1_new


# --------------------------------------------------------------------------
# Public wrappers
# --------------------------------------------------------------------------
def cll_dense_forward_seq(x_seq, eps0, eps1, prepared, *, alpha=0.9, alphas=0.85,
                          spike_dtype=jnp.bfloat16, pv_dtype=jnp.bfloat16,
                          max_time_chunk=None):
    """Fused multi-timestep CLLDense forward.

    x_seq: [T, B, Cin], eps0/eps1: [B, Cin] initial state,
    prepared = prepare_cll_dense_params(weight, bias).
    Returns (spikes [T,B,Cout], pv [T,B,Cout], vmem [T,B,Cout] f32,
             eps0_final [B,Cin] f32, eps1_final [B,Cin] f32).
    """
    wt_p, bias_p, cout = prepared
    T, B, _ = (int(d) for d in x_seq.shape)
    Cin_p, Cout_p = (int(d) for d in wt_p.shape)

    cap = _vmem_capacity_bytes()
    # Generation-aware working-set budget: ~80 MiB on 128-MiB-VMEM parts
    # (v5e/v6e); ~45% of capacity on smaller parts (v7x: 64 MiB -> ~28 MiB).
    budget = 80 * _MIB if cap >= 100 * _MIB else int(cap * 0.45)

    b16 = _round_up(B, 16)
    tb, tc = _choose_tiles(T, b16, Cin_p, Cout_p, budget, max_time_chunk)
    b_p = _round_up(b16, tb)
    t_p = _round_up(T, tc)

    est = _est_vmem_bytes(tb, tc, Cin_p, Cout_p)
    # `est` already includes double buffering: request est + modest headroom.
    vmem_limit = int(max(32 * _MIB, min(cap - 8 * _MIB, est + 12 * _MIB)))

    return _cll_dense_impl(
        x_seq, eps0, eps1, wt_p, bias_p,
        alpha=float(alpha), alphas=float(alphas), cout=cout,
        tb=tb, tc=tc, t_p=t_p, b_p=b_p,
        spike_dtype=spike_dtype, pv_dtype=pv_dtype, vmem_limit=vmem_limit)


def cll_dense_forward(x, eps0, eps1, prepared, *, alpha=0.9, alphas=0.85,
                      spike_dtype=jnp.bfloat16, pv_dtype=jnp.bfloat16):
    """Single-timestep forward (one DCLLBase.forward step).
    Returns (output, pv, vmem, eps0_new, eps1_new)."""
    spk, pv, vmem, e0, e1 = cll_dense_forward_seq(
        x[None, ...], eps0, eps1, prepared, alpha=alpha, alphas=alphas,
        spike_dtype=spike_dtype, pv_dtype=pv_dtype)
    return spk[0], pv[0], vmem[0], e0, e1


# --------------------------------------------------------------------------
# Pure-JAX reference + self-test
# --------------------------------------------------------------------------
def _reference_seq(x_seq, eps0, eps1, weight, bias, alpha=0.9, alphas=0.85):
    tau_m__dt = 1.0 / (1.0 - alpha)
    tau_s__dt = 1.0 / (1.0 - alphas)
    e0, e1 = eps0, eps1
    vmems = []
    for t in range(x_seq.shape[0]):
        e0 = x_seq[t] * tau_s__dt + alphas * e0
        e1 = alpha * e1 + e0 * tau_m__dt
        vmems.append(e1 @ weight.T + bias)
    vmem = jnp.stack(vmems)
    pv = jax.nn.sigmoid(vmem)
    spk = (vmem > 0).astype(jnp.float32)
    return spk, pv, vmem, e0, e1


if __name__ == "__main__":
    # Small shapes consistent with the module (dense SNN layer over feature vectors).
    T, batch, in_channels, out_channels = 10, 4, 32, 48

    key = jax.random.PRNGKey(0)
    k_w, k_b, k_x, k_e0, k_e1 = jax.random.split(key, 5)

    # reset_parameters(): stdv = 1/sqrt(in_channels)
    stdv = 1.0 / math.sqrt(in_channels)
    weight = jax.random.uniform(
        k_w, (out_channels, in_channels), jnp.float32,
        minval=-stdv * 0.01, maxval=stdv * 0.01)
    bias = jax.random.uniform(
        k_b, (out_channels,), jnp.float32, minval=-stdv, maxval=stdv)

    # input spikes and nonzero initial state (init_hiddens -> zeros normally).
    x_seq = (jax.random.uniform(k_x, (T, batch, in_channels)) > 0.5).astype(jnp.float32)
    eps0 = jax.random.normal(k_e0, (batch, in_channels), jnp.float32) * 0.1
    eps1 = jax.random.normal(k_e1, (batch, in_channels), jnp.float32) * 0.1

    # one-time per-layer prep (hoisted out of the timestep loop)
    prepared = prepare_cll_dense_params(weight, bias)

    # ---- run 1: default tiling (single time chunk, single batch tile) ----
    spk, pv, vmem, e0_new, e1_new = cll_dense_forward_seq(
        x_seq, eps0, eps1, prepared, alpha=0.9, alphas=0.85)
    jax.block_until_ready((spk, pv, vmem, e0_new, e1_new))

    r_spk, r_pv, r_vmem, r_e0, r_e1 = _reference_seq(
        x_seq, eps0, eps1, weight, bias, 0.9, 0.85)

    # bf16 matmul operands / bf16 pv stream -> loosened tolerances on vmem/pv.
    assert jnp.allclose(vmem, r_vmem, atol=5e-2, rtol=2e-2), "vmem mismatch"
    assert jnp.allclose(pv.astype(jnp.float32), r_pv, atol=2e-2, rtol=2e-2), "pv mismatch"

    spk_f = spk.astype(jnp.float32)
    # spikes must be consistent with the kernel's own vmem ...
    assert jnp.array_equal(spk_f, (vmem > 0).astype(jnp.float32)), "spike/vmem inconsistency"
    # ... and match the reference wherever the threshold decision is not borderline.
    decided = jnp.abs(r_vmem) > 5e-2
    assert jnp.all((spk_f == r_spk) | ~decided), "spike mismatch"

    # state recursion is pure f32 -> tight tolerance
    assert jnp.allclose(e0_new, r_e0, atol=1e-3, rtol=1e-5), "eps0 mismatch"
    assert jnp.allclose(e1_new, r_e1, atol=1e-3, rtol=1e-5), "eps1 mismatch"

    # ---- run 2: multi batch-tile + partial last time chunk (mask path) ----
    T2, batch2 = 9, 20
    x2 = (jax.random.uniform(jax.random.PRNGKey(1),
                             (T2, batch2, in_channels)) > 0.7).astype(jnp.float32)
    e0_2 = jnp.zeros((batch2, in_channels), jnp.float32)
    e1_2 = jnp.zeros((batch2, in_channels), jnp.float32)
    spk2, pv2, vm2, e0n2, e1n2 = cll_dense_forward_seq(
        x2, e0_2, e1_2, prepared, alpha=0.9, alphas=0.85, max_time_chunk=4)
    jax.block_until_ready((spk2, pv2, vm2, e0n2, e1n2))
    _, _, r_vm2, r_e0_2, r_e1_2 = _reference_seq(x2, e0_2, e1_2, weight, bias, 0.9, 0.85)
    assert jnp.allclose(vm2, r_vm2, atol=5e-2, rtol=2e-2), "chunked vmem mismatch"
    assert jnp.allclose(e0n2, r_e0_2, atol=1e-3, rtol=1e-5), "chunked eps0 mismatch"
    assert jnp.allclose(e1n2, r_e1_2, atol=1e-3, rtol=1e-5), "chunked eps1 mismatch"

    # ---- run 3: single-timestep wrapper (one DCLLBase.forward call) ----
    o1, pv1, vm1, e0_1, e1_1 = cll_dense_forward(
        x_seq[0], eps0, eps1, prepared, alpha=0.9, alphas=0.85)
    jax.block_until_ready((o1, pv1, vm1, e0_1, e1_1))
    assert jnp.allclose(vm1, r_vmem[0], atol=5e-2, rtol=2e-2), "single-step vmem mismatch"

    print("KERNEL_OK")
</pallas_src>

<mosaic_0001>
module attributes {stable_mosaic.version = 11 : i64} {
  func.func @_cll_dense_chunk_kernel(%arg0: i32, %arg1: i32, %arg2: memref<10x16x128xbf16, #tpu.memory_space<vmem>>, %arg3: memref<16x128xf32, #tpu.memory_space<vmem>>, %arg4: memref<16x128xf32, #tpu.memory_space<vmem>>, %arg5: memref<128x128xbf16, #tpu.memory_space<vmem>>, %arg6: memref<1x128xf32, #tpu.memory_space<vmem>>, %arg7: memref<10x16x128xbf16, #tpu.memory_space<vmem>>, %arg8: memref<10x16x128xbf16, #tpu.memory_space<vmem>>, %arg9: memref<10x16x128xf32, #tpu.memory_space<vmem>>, %arg10: memref<16x128xf32, #tpu.memory_space<vmem>>, %arg11: memref<16x128xf32, #tpu.memory_space<vmem>>, %arg12: memref<160x128xbf16, #tpu.memory_space<vmem>>) attributes {dimension_semantics = [#tpu.dimension_semantics<parallel>, #tpu.dimension_semantics<arbitrary>], iteration_bounds = array<i64: 1, 1>, scalar_prefetch = 0 : i64, scratch_operands = 1 : i64, tpu.core_type = #tpu.core_type<tc>, window_params = [{transform_indices = @transform_0, window_bounds = array<i64: 10, 16, 128>}, {transform_indices = @transform_1, window_bounds = array<i64: 16, 128>}, {transform_indices = @transform_2, window_bounds = array<i64: 16, 128>}, {pipeline_mode = #tpu.pipeline_mode<synchronous>, transform_indices = @transform_3, window_bounds = array<i64: 128, 128>}, {pipeline_mode = #tpu.pipeline_mode<synchronous>, transform_indices = @transform_4, window_bounds = array<i64: 1, 128>}, {transform_indices = @transform_5, window_bounds = array<i64: 10, 16, 128>}, {transform_indices = @transform_6, window_bounds = array<i64: 10, 16, 128>}, {transform_indices = @transform_7, window_bounds = array<i64: 10, 16, 128>}, {transform_indices = @transform_8, window_bounds = array<i64: 16, 128>}, {transform_indices = @transform_9, window_bounds = array<i64: 16, 128>}]} {
    %c0_i32 = arith.constant 0 : i32
    %0 = arith.cmpi eq, %arg1, %c0_i32 : i32
    %1 = arith.extui %0 : i1 to i32
    %c0_i32_0 = arith.constant 0 : i32
    %2 = arith.cmpi ne, %1, %c0_i32_0 : i32
    scf.if %2 {
      %c0_97 = arith.constant 0 : index
      %c0_98 = arith.constant 0 : index
      %178 = vector.load %arg3[%c0_97, %c0_98] : memref<16x128xf32, #tpu.memory_space<vmem>>, vector<16x128xf32>
      %c0_99 = arith.constant 0 : index
      %c0_100 = arith.constant 0 : index
      %179 = vector.load %arg10[%c0_99, %c0_100] : memref<16x128xf32, #tpu.memory_space<vmem>>, vector<16x128xf32>
      tpu.vector_store %arg10[%c0_99, %c0_100], %178 {strides = array<i32>} : memref<16x128xf32, #tpu.memory_space<vmem>>, vector<16x128xf32>,
      %c0_101 = arith.constant 0 : index
      %c0_102 = arith.constant 0 : index
      %180 = vector.load %arg4[%c0_101, %c0_102] : memref<16x128xf32, #tpu.memory_space<vmem>>, vector<16x128xf32>
      %c0_103 = arith.constant 0 : index
      %c0_104 = arith.constant 0 : index
      %181 = vector.load %arg11[%c0_103, %c0_104] : memref<16x128xf32, #tpu.memory_space<vmem>>, vector<16x128xf32>
      tpu.vector_store %arg11[%c0_103, %c0_104], %180 {strides = array<i32>} : memref<16x128xf32, #tpu.memory_space<vmem>>, vector<16x128xf32>,
    } else {
    }
    %c0 = arith.constant 0 : index
    %c0_1 = arith.constant 0 : index
    %3 = vector.load %arg10[%c0, %c0_1] : memref<16x128xf32, #tpu.memory_space<vmem>>, vector<16x128xf32>
    %c0_2 = arith.constant 0 : index
    %c0_3 = arith.constant 0 : index
    %4 = vector.load %arg11[%c0_2, %c0_3] : memref<16x128xf32, #tpu.memory_space<vmem>>, vector<16x128xf32>
    %c0_4 = arith.constant 0 : index
    %c0_5 = arith.constant 0 : index
    %c0_6 = arith.constant 0 : index
    %5 = vector.load %arg2[%c0_4, %c0_5, %c0_6] : memref<10x16x128xbf16, #tpu.memory_space<vmem>>, vector<1x16x128xbf16>
    %6 = vector.shape_cast %5 : vector<1x16x128xbf16> to vector<16x128xbf16>
    %7 = arith.extf %6 : vector<16x128xbf16> to vector<16x128xf32>
    %cst = arith.constant 6.66666651 : f32
    %8 = vector.broadcast %cst : f32 to vector<16x128xf32>
    %9 = arith.mulf %7, %8 : vector<16x128xf32>
    %cst_7 = arith.constant 8.500000e-01 : f32
    %10 = vector.broadcast %cst_7 : f32 to vector<16x128xf32>
    %11 = arith.mulf %10, %3 : vector<16x128xf32>
    %12 = arith.addf %9, %11 : vector<16x128xf32>
    %cst_8 = arith.constant 0.899999976 : f32
    %13 = vector.broadcast %cst_8 : f32 to vector<16x128xf32>
    %14 = arith.mulf %13, %4 : vector<16x128xf32>
    %cst_9 = arith.constant 1.000000e+01 : f32
    %15 = vector.broadcast %cst_9 : f32 to vector<16x128xf32>
    %16 = arith.mulf %12, %15 : vector<16x128xf32>
    %17 = arith.addf %14, %16 : vector<16x128xf32>
    %18 = arith.truncf %17 : vector<16x128xf32> to vector<16x128xbf16>
    %c0_10 = arith.constant 0 : index
    %c0_11 = arith.constant 0 : index
    %19 = vector.load %arg12[%c0_10, %c0_11] : memref<160x128xbf16, #tpu.memory_space<vmem>>, vector<16x128xbf16>
    tpu.vector_store %arg12[%c0_10, %c0_11], %18 {strides = array<i32>} : memref<160x128xbf16, #tpu.memory_space<vmem>>, vector<16x128xbf16>,
    %c1 = arith.constant 1 : index
    %c0_12 = arith.constant 0 : index
    %c0_13 = arith.constant 0 : index
    %20 = vector.load %arg2[%c1, %c0_12, %c0_13] : memref<10x16x128xbf16, #tpu.memory_space<vmem>>, vector<1x16x128xbf16>
    %21 = vector.shape_cast %20 : vector<1x16x128xbf16> to vector<16x128xbf16>
    %22 = arith.extf %21 : vector<16x128xbf16> to vector<16x128xf32>
    %cst_14 = arith.constant 6.66666651 : f32
    %23 = vector.broadcast %cst_14 : f32 to vector<16x128xf32>
    %24 = arith.mulf %22, %23 : vector<16x128xf32>
    %cst_15 = arith.constant 8.500000e-01 : f32
    %25 = vector.broadcast %cst_15 : f32 to vector<16x128xf32>
    %26 = arith.mulf %25, %12 : vector<16x128xf32>
    %27 = arith.addf %24, %26 : vector<16x128xf32>
    %cst_16 = arith.constant 0.899999976 : f32
    %28 = vector.broadcast %cst_16 : f32 to vector<16x128xf32>
    %29 = arith.mulf %28, %17 : vector<16x128xf32>
    %cst_17 = arith.constant 1.000000e+01 : f32
    %30 = vector.broadcast %cst_17 : f32 to vector<16x128xf32>
    %31 = arith.mulf %27, %30 : vector<16x128xf32>
    %32 = arith.addf %29, %31 : vector<16x128xf32>
    %33 = arith.truncf %32 : vector<16x128xf32> to vector<16x128xbf16>
    %c16 = arith.constant 16 : index
    %c0_18 = arith.constant 0 : index
    %34 = vector.load %arg12[%c16, %c0_18] : memref<160x128xbf16, #tpu.memory_space<vmem>>, vector<16x128xbf16>
    tpu.vector_store %arg12[%c16, %c0_18], %33 {strides = array<i32>} : memref<160x128xbf16, #tpu.memory_space<vmem>>, vector<16x128xbf16>,
    %c2 = arith.constant 2 : index
    %c0_19 = arith.constant 0 : index
    %c0_20 = arith.constant 0 : index
    %35 = vector.load %arg2[%c2, %c0_19, %c0_20] : memref<10x16x128xbf16, #tpu.memory_space<vmem>>, vector<1x16x128xbf16>
    %36 = vector.shape_cast %35 : vector<1x16x128xbf16> to vector<16x128xbf16>
    %37 = arith.extf %36 : vector<16x128xbf16> to vector<16x128xf32>
    %cst_21 = arith.constant 6.66666651 : f32
    %38 = vector.broadcast %cst_21 : f32 to vector<16x128xf32>
    %39 = arith.mulf %37, %38 : vector<16x128xf32>
    %cst_22 = arith.constant 8.500000e-01 : f32
    %40 = vector.broadcast %cst_22 : f32 to vector<16x128xf32>
    %41 = arith.mulf %40, %27 : vector<16x128xf32>
    %42 = arith.addf %39, %41 : vector<16x128xf32>
    %cst_23 = arith.constant 0.899999976 : f32
    %43 = vector.broadcast %cst_23 : f32 to vector<16x128xf32>
    %44 = arith.mulf %43, %32 : vector<16x128xf32>
    %cst_24 = arith.constant 1.000000e+01 : f32
    %45 = vector.broadcast %cst_24 : f32 to vector<16x128xf32>
    %46 = arith.mulf %42, %45 : vector<16x128xf32>
    %47 = arith.addf %44, %46 : vector<16x128xf32>
    %48 = arith.truncf %47 : vector<16x128xf32> to vector<16x128xbf16>
    %c32 = arith.constant 32 : index
    %c0_25 = arith.constant 0 : index
    %49 = vector.load %arg12[%c32, %c0_25] : memref<160x128xbf16, #tpu.memory_space<vmem>>, vector<16x128xbf16>
    tpu.vector_store %arg12[%c32, %c0_25], %48 {strides = array<i32>} : memref<160x128xbf16, #tpu.memory_space<vmem>>, vector<16x128xbf16>,
    %c3 = arith.constant 3 : index
    %c0_26 = arith.constant 0 : index
    %c0_27 = arith.constant 0 : index
    %50 = vector.load %arg2[%c3, %c0_26, %c0_27] : memref<10x16x128xbf16, #tpu.memory_space<vmem>>, vector<1x16x128xbf16>
    %51 = vector.shape_cast %50 : vector<1x16x128xbf16> to vector<16x128xbf16>
    %52 = arith.extf %51 : vector<16x128xbf16> to vector<16x128xf32>
    %cst_28 = arith.constant 6.66666651 : f32
    %53 = vector.broadcast %cst_28 : f32 to vector<16x128xf32>
    %54 = arith.mulf %52, %53 : vector<16x128xf32>
    %cst_29 = arith.constant 8.500000e-01 : f32
    %55 = vector.broadcast %cst_29 : f32 to vector<16x128xf32>
    %56 = arith.mulf %55, %42 : vector<16x128xf32>
    %57 = arith.addf %54, %56 : vector<16x128xf32>
    %cst_30 = arith.constant 0.899999976 : f32
    %58 = vector.broadcast %cst_30 : f32 to vector<16x128xf32>
    %59 = arith.mulf %58, %47 : vector<16x128xf32>
    %cst_31 = arith.constant 1.000000e+01 : f32
    %60 = vector.broadcast %cst_31 : f32 to vector<16x128xf32>
    %61 = arith.mulf %57, %60 : vector<16x128xf32>
    %62 = arith.addf %59, %61 : vector<16x128xf32>
    %63 = arith.truncf %62 : vector<16x128xf32> to vector<16x128xbf16>
    %c48 = arith.constant 48 : index
    %c0_32 = arith.constant 0 : index
    %64 = vector.load %arg12[%c48, %c0_32] : memref<160x128xbf16, #tpu.memory_space<vmem>>, vector<16x128xbf16>
    tpu.vector_store %arg12[%c48, %c0_32], %63 {strides = array<i32>} : memref<160x128xbf16, #tpu.memory_space<vmem>>, vector<16x128xbf16>,
    %c4 = arith.constant 4 : index
    %c0_33 = arith.constant 0 : index
    %c0_34 = arith.constant 0 : index
    %65 = vector.load %arg2[%c4, %c0_33, %c0_34] : memref<10x16x128xbf16, #tpu.memory_space<vmem>>, vector<1x16x128xbf16>
    %66 = vector.shape_cast %65 : vector<1x16x128xbf16> to vector<16x128xbf16>
    %67 = arith.extf %66 : vector<16x128xbf16> to vector<16x128xf32>
    %cst_35 = arith.constant 6.66666651 : f32
    %68 = vector.broadcast %cst_35 : f32 to vector<16x128xf32>
    %69 = arith.mulf %67, %68 : vector<16x128xf32>
    %cst_36 = arith.constant 8.500000e-01 : f32
    %70 = vector.broadcast %cst_36 : f32 to vector<16x128xf32>
    %71 = arith.mulf %70, %57 : vector<16x128xf32>
    %72 = arith.addf %69, %71 : vector<16x128xf32>
    %cst_37 = arith.constant 0.899999976 : f32
    %73 = vector.broadcast %cst_37 : f32 to vector<16x128xf32>
    %74 = arith.mulf %73, %62 : vector<16x128xf32>
    %cst_38 = arith.constant 1.000000e+01 : f32
    %75 = vector.broadcast %cst_38 : f32 to vector<16x128xf32>
    %76 = arith.mulf %72, %75 : vector<16x128xf32>
    %77 = arith.addf %74, %76 : vector<16x128xf32>
    %78 = arith.truncf %77 : vector<16x128xf32> to vector<16x128xbf16>
    %c64 = arith.constant 64 : index
    %c0_39 = arith.constant 0 : index
    %79 = vector.load %arg12[%c64, %c0_39] : memref<160x128xbf16, #tpu.memory_space<vmem>>, vector<16x128xbf16>
    tpu.vector_store %arg12[%c64, %c0_39], %78 {strides = array<i32>} : memref<160x128xbf16, #tpu.memory_space<vmem>>, vector<16x128xbf16>,
    %c5 = arith.constant 5 : index
    %c0_40 = arith.constant 0 : index
    %c0_41 = arith.constant 0 : index
    %80 = vector.load %arg2[%c5, %c0_40, %c0_41] : memref<10x16x128xbf16, #tpu.memory_space<vmem>>, vector<1x16x128xbf16>
    %81 = vector.shape_cast %80 : vector<1x16x128xbf16> to vector<16x128xbf16>
    %82 = arith.extf %81 : vector<16x128xbf16> to vector<16x128xf32>
    %cst_42 = arith.constant 6.66666651 : f32
    %83 = vector.broadcast %cst_42 : f32 to vector<16x128xf32>
    %84 = arith.mulf %82, %83 : vector<16x128xf32>
    %cst_43 = arith.constant 8.500000e-01 : f32
    %85 = vector.broadcast %cst_43 : f32 to vector<16x128xf32>
    %86 = arith.mulf %85, %72 : vector<16x128xf32>
    %87 = arith.addf %84, %86 : vector<16x128xf32>
    %cst_44 = arith.constant 0.899999976 : f32
    %88 = vector.broadcast %cst_44 : f32 to vector<16x128xf32>
    %89 = arith.mulf %88, %77 : vector<16x128xf32>
    %cst_45 = arith.constant 1.000000e+01 : f32
    %90 = vector.broadcast %cst_45 : f32 to vector<16x128xf32>
    %91 = arith.mulf %87, %90 : vector<16x128xf32>
    %92 = arith.addf %89, %91 : vector<16x128xf32>
    %93 = arith.truncf %92 : vector<16x128xf32> to vector<16x128xbf16>
    %c80 = arith.constant 80 : index
    %c0_46 = arith.constant 0 : index
    %94 = vector.load %arg12[%c80, %c0_46] : memref<160x128xbf16, #tpu.memory_space<vmem>>, vector<16x128xbf16>
    tpu.vector_store %arg12[%c80, %c0_46], %93 {strides = array<i32>} : memref<160x128xbf16, #tpu.memory_space<vmem>>, vector<16x128xbf16>,
    %c6 = arith.constant 6 : index
    %c0_47 = arith.constant 0 : index
    %c0_48 = arith.constant 0 : index
    %95 = vector.load %arg2[%c6, %c0_47, %c0_48] : memref<10x16x128xbf16, #tpu.memory_space<vmem>>, vector<1x16x128xbf16>
    %96 = vector.shape_cast %95 : vector<1x16x128xbf16> to vector<16x128xbf16>
    %97 = arith.extf %96 : vector<16x128xbf16> to vector<16x128xf32>
    %cst_49 = arith.constant 6.66666651 : f32
    %98 = vector.broadcast %cst_49 : f32 to vector<16x128xf32>
    %99 = arith.mulf %97, %98 : vector<16x128xf32>
    %cst_50 = arith.constant 8.500000e-01 : f32
    %100 = vector.broadcast %cst_50 : f32 to vector<16x128xf32>
    %101 = arith.mulf %100, %87 : vector<16x128xf32>
    %102 = arith.addf %99, %101 : vector<16x128xf32>
    %cst_51 = arith.constant 0.899999976 : f32
    %103 = vector.broadcast %cst_51 : f32 to vector<16x128xf32>
    %104 = arith.mulf %103, %92 : vector<16x128xf32>
    %cst_52 = arith.constant 1.000000e+01 : f32
    %105 = vector.broadcast %cst_52 : f32 to vector<16x128xf32>
    %106 = arith.mulf %102, %105 : vector<16x128xf32>
    %107 = arith.addf %104, %106 : vector<16x128xf32>
    %108 = arith.truncf %107 : vector<16x128xf32> to vector<16x128xbf16>
    %c96 = arith.constant 96 : index
    %c0_53 = arith.constant 0 : index
    %109 = vector.load %arg12[%c96, %c0_53] : memref<160x128xbf16, #tpu.memory_space<vmem>>, vector<16x128xbf16>
    tpu.vector_store %arg12[%c96, %c0_53], %108 {strides = array<i32>} : memref<160x128xbf16, #tpu.memory_space<vmem>>, vector<16x128xbf16>,
    %c7 = arith.constant 7 : index
    %c0_54 = arith.constant 0 : index
    %c0_55 = arith.constant 0 : index
    %110 = vector.load %arg2[%c7, %c0_54, %c0_55] : memref<10x16x128xbf16, #tpu.memory_space<vmem>>, vector<1x16x128xbf16>
    %111 = vector.shape_cast %110 : vector<1x16x128xbf16> to vector<16x128xbf16>
    %112 = arith.extf %111 : vector<16x128xbf16> to vector<16x128xf32>
    %cst_56 = arith.constant 6.66666651 : f32
    %113 = vector.broadcast %cst_56 : f32 to vector<16x128xf32>
    %114 = arith.mulf %112, %113 : vector<16x128xf32>
    %cst_57 = arith.constant 8.500000e-01 : f32
    %115 = vector.broadcast %cst_57 : f32 to vector<16x128xf32>
    %116 = arith.mulf %115, %102 : vector<16x128xf32>
    %117 = arith.addf %114, %116 : vector<16x128xf32>
    %cst_58 = arith.constant 0.899999976 : f32
    %118 = vector.broadcast %cst_58 : f32 to vector<16x128xf32>
    %119 = arith.mulf %118, %107 : vector<16x128xf32>
    %cst_59 = arith.constant 1.000000e+01 : f32
    %120 = vector.broadcast %cst_59 : f32 to vector<16x128xf32>
    %121 = arith.mulf %117, %120 : vector<16x128xf32>
    %122 = arith.addf %119, %121 : vector<16x128xf32>
    %123 = arith.truncf %122 : vector<16x128xf32> to vector<16x128xbf16>
    %c112 = arith.constant 112 : index
    %c0_60 = arith.constant 0 : index
    %124 = vector.load %arg12[%c112, %c0_60] : memref<160x128xbf16, #tpu.memory_space<vmem>>, vector<16x128xbf16>
    tpu.vector_store %arg12[%c112, %c0_60], %123 {strides = array<i32>} : memref<160x128xbf16, #tpu.memory_space<vmem>>, vector<16x128xbf16>,
    %c8 = arith.constant 8 : index
    %c0_61 = arith.constant 0 : index
    %c0_62 = arith.constant 0 : index
    %125 = vector.load %arg2[%c8, %c0_61, %c0_62] : memref<10x16x128xbf16, #tpu.memory_space<vmem>>, vector<1x16x128xbf16>
    %126 = vector.shape_cast %125 : vector<1x16x128xbf16> to vector<16x128xbf16>
    %127 = arith.extf %126 : vector<16x128xbf16> to vector<16x128xf32>
    %cst_63 = arith.constant 6.66666651 : f32
    %128 = vector.broadcast %cst_63 : f32 to vector<16x128xf32>
    %129 = arith.mulf %127, %128 : vector<16x128xf32>
    %cst_64 = arith.constant 8.500000e-01 : f32
    %130 = vector.broadcast %cst_64 : f32 to vector<16x128xf32>
    %131 = arith.mulf %130, %117 : vector<16x128xf32>
    %132 = arith.addf %129, %131 : vector<16x128xf32>
    %cst_65 = arith.constant 0.899999976 : f32
    %133 = vector.broadcast %cst_65 : f32 to vector<16x128xf32>
    %134 = arith.mulf %133, %122 : vector<16x128xf32>
    %cst_66 = arith.constant 1.000000e+01 : f32
    %135 = vector.broadcast %cst_66 : f32 to vector<16x128xf32>
    %136 = arith.mulf %132, %135 : vector<16x128xf32>
    %137 = arith.addf %134, %136 : vector<16x128xf32>
    %138 = arith.truncf %137 : vector<16x128xf32> to vector<16x128xbf16>
    %c128 = arith.constant 128 : index
    %c0_67 = arith.constant 0 : index
    %139 = vector.load %arg12[%c128, %c0_67] : memref<160x128xbf16, #tpu.memory_space<vmem>>, vector<16x128xbf16>
    tpu.vector_store %arg12[%c128, %c0_67], %138 {strides = array<i32>} : memref<160x128xbf16, #tpu.memory_space<vmem>>, vector<16x128xbf16>,
    %c9 = arith.constant 9 : index
    %c0_68 = arith.constant 0 : index
    %c0_69 = arith.constant 0 : index
    %140 = vector.load %arg2[%c9, %c0_68, %c0_69] : memref<10x16x128xbf16, #tpu.memory_space<vmem>>, vector<1x16x128xbf16>
    %141 = vector.shape_cast %140 : vector<1x16x128xbf16> to vector<16x128xbf16>
    %142 = arith.extf %141 : vector<16x128xbf16> to vector<16x128xf32>
    %cst_70 = arith.constant 6.66666651 : f32
    %143 = vector.broadcast %cst_70 : f32 to vector<16x128xf32>
    %144 = arith.mulf %142, %143 : vector<16x128xf32>
    %cst_71 = arith.constant 8.500000e-01 : f32
    %145 = vector.broadcast %cst_71 : f32 to vector<16x128xf32>
    %146 = arith.mulf %145, %132 : vector<16x128xf32>
    %147 = arith.addf %144, %146 : vector<16x128xf32>
    %cst_72 = arith.constant 0.899999976 : f32
    %148 = vector.broadcast %cst_72 : f32 to vector<16x128xf32>
    %149 = arith.mulf %148, %137 : vector<16x128xf32>
    %cst_73 = arith.constant 1.000000e+01 : f32
    %150 = vector.broadcast %cst_73 : f32 to vector<16x128xf32>
    %151 = arith.mulf %147, %150 : vector<16x128xf32>
    %152 = arith.addf %149, %151 : vector<16x128xf32>
    %153 = arith.truncf %152 : vector<16x128xf32> to vector<16x128xbf16>
    %c144 = arith.constant 144 : index
    %c0_74 = arith.constant 0 : index
    %154 = vector.load %arg12[%c144, %c0_74] : memref<160x128xbf16, #tpu.memory_space<vmem>>, vector<16x128xbf16>
    tpu.vector_store %arg12[%c144, %c0_74], %153 {strides = array<i32>} : memref<160x128xbf16, #tpu.memory_space<vmem>>, vector<16x128xbf16>,
    %c0_75 = arith.constant 0 : index
    %c0_76 = arith.constant 0 : index
    %155 = vector.load %arg10[%c0_75, %c0_76] : memref<16x128xf32, #tpu.memory_space<vmem>>, vector<16x128xf32>
    tpu.vector_store %arg10[%c0_75, %c0_76], %147 {strides = array<i32>} : memref<16x128xf32, #tpu.memory_space<vmem>>, vector<16x128xf32>,
    %c0_77 = arith.constant 0 : index
    %c0_78 = arith.constant 0 : index
    %156 = vector.load %arg11[%c0_77, %c0_78] : memref<16x128xf32, #tpu.memory_space<vmem>>, vector<16x128xf32>
    tpu.vector_store %arg11[%c0_77, %c0_78], %152 {strides = array<i32>} : memref<16x128xf32, #tpu.memory_space<vmem>>, vector<16x128xf32>,
    %c0_79 = arith.constant 0 : index
    %c0_80 = arith.constant 0 : index
    %157 = vector.load %arg12[%c0_79, %c0_80] : memref<160x128xbf16, #tpu.memory_space<vmem>>, vector<160x128xbf16>
    %c0_81 = arith.constant 0 : index
    %c0_82 = arith.constant 0 : index
    %158 = vector.load %arg5[%c0_81, %c0_82] : memref<128x128xbf16, #tpu.memory_space<vmem>>, vector<128x128xbf16>
    %cst_83 = arith.constant dense<0.000000e+00> : vector<160x128xf32>
    %159 = tpu.matmul %157, %158, %cst_83 {dimension_numbers = #tpu.dot_dimension_numbers<[1], [0], [0], [1], [0, 0, 1, 1], [], []>} : vector<160x128xbf16>, vector<128x128xbf16>, vector<160x128xf32> -> vector<160x128xf32>
    %c0_84 = arith.constant 0 : index
    %c0_85 = arith.constant 0 : index
    %160 = vector.load %arg6[%c0_84, %c0_85] : memref<1x128xf32, #tpu.memory_space<vmem>>, vector<1x128xf32>
    %161 = vector.broadcast %160 : vector<1x128xf32> to vector<160x128xf32>
    %162 = arith.addf %159, %161 : vector<160x128xf32>
    %163 = vector.shape_cast %162 : vector<160x128xf32> to vector<10x16x128xf32>
    %c0_86 = arith.constant 0 : index
    %c0_87 = arith.constant 0 : index
    %c0_88 = arith.constant 0 : index
    %164 = vector.load %arg9[%c0_86, %c0_87, %c0_88] : memref<10x16x128xf32, #tpu.memory_space<vmem>>, vector<10x16x128xf32>
    tpu.vector_store %arg9[%c0_86, %c0_87, %c0_88], %163 {strides = array<i32>} : memref<10x16x128xf32, #tpu.memory_space<vmem>>, vector<10x16x128xf32>,
    %165 = arith.negf %163 : vector<10x16x128xf32>
    %166 = math.exp %165 : vector<10x16x128xf32>
    %cst_89 = arith.constant 1.000000e+00 : f32
    %167 = vector.broadcast %cst_89 : f32 to vector<10x16x128xf32>
    %168 = arith.addf %167, %166 : vector<10x16x128xf32>
    %169 = arith.divf %167, %168 : vector<10x16x128xf32>
    %170 = arith.truncf %169 : vector<10x16x128xf32> to vector<10x16x128xbf16>
    %c0_90 = arith.constant 0 : index
    %c0_91 = arith.constant 0 : index
    %c0_92 = arith.constant 0 : index
    %171 = vector.load %arg8[%c0_90, %c0_91, %c0_92] : memref<10x16x128xbf16, #tpu.memory_space<vmem>>, vector<10x16x128xbf16>
    tpu.vector_store %arg8[%c0_90, %c0_91, %c0_92], %170 {strides = array<i32>} : memref<10x16x128xbf16, #tpu.memory_space<vmem>>, vector<10x16x128xbf16>,
    %cst_93 = arith.constant 0.000000e+00 : f32
    %172 = vector.broadcast %cst_93 : f32 to vector<10x16x128xf32>
    %173 = arith.cmpf ogt, %163, %172 : vector<10x16x128xf32>
    %174 = arith.extui %173 : vector<10x16x128xi1> to vector<10x16x128xi32>
    %175 = arith.sitofp %174 : vector<10x16x128xi32> to vector<10x16x128xf32>
    %176 = arith.truncf %175 : vector<10x16x128xf32> to vector<10x16x128xbf16>
    %c0_94 = arith.constant 0 : index
    %c0_95 = arith.constant 0 : index
    %c0_96 = arith.constant 0 : index
    %177 = vector.load %arg7[%c0_94, %c0_95, %c0_96] : memref<10x16x128xbf16, #tpu.memory_space<vmem>>, vector<10x16x128xbf16>
    tpu.vector_store %arg7[%c0_94, %c0_95, %c0_96], %176 {strides = array<i32>} : memref<10x16x128xbf16, #tpu.memory_space<vmem>>, vector<10x16x128xbf16>,
    return
  }
  func.func @transform_0(%arg0: i32, %arg1: i32) -> (i32, i32, i32) {
    %c0_i32 = arith.constant 0 : i32
    %c0_i32_0 = arith.constant 0 : i32
    return %arg1, %arg0, %c0_i32 : i32, i32, i32
  }
  func.func @transform_1(%arg0: i32, %arg1: i32) -> (i32, i32) {
    %c0_i32 = arith.constant 0 : i32
    %c0_i32_0 = arith.constant 0 : i32
    return %arg0, %c0_i32 : i32, i32
  }
  func.func @transform_2(%arg0: i32, %arg1: i32) -> (i32, i32) {
    %c0_i32 = arith.constant 0 : i32
    %c0_i32_0 = arith.constant 0 : i32
    return %arg0, %c0_i32 : i32, i32
  }
  func.func @transform_3(%arg0: i32, %arg1: i32) -> (i32, i32) {
    %c0_i32 = arith.constant 0 : i32
    %c0_i32_0 = arith.constant 0 : i32
    %c0_i32_1 = arith.constant 0 : i32
    return %c0_i32, %c0_i32_0 : i32, i32
  }
  func.func @transform_4(%arg0: i32, %arg1: i32) -> (i32, i32) {
    %c0_i32 = arith.constant 0 : i32
    %c0_i32_0 = arith.constant 0 : i32
    %c0_i32_1 = arith.constant 0 : i32
    return %c0_i32, %c0_i32_0 : i32, i32
  }
  func.func @transform_5(%arg0: i32, %arg1: i32) -> (i32, i32, i32) {
    %c0_i32 = arith.constant 0 : i32
    %c0_i32_0 = arith.constant 0 : i32
    return %arg1, %arg0, %c0_i32 : i32, i32, i32
  }
  func.func @transform_6(%arg0: i32, %arg1: i32) -> (i32, i32, i32) {
    %c0_i32 = arith.constant 0 : i32
    %c0_i32_0 = arith.constant 0 : i32
    return %arg1, %arg0, %c0_i32 : i32, i32, i32
  }
  func.func @transform_7(%arg0: i32, %arg1: i32) -> (i32, i32, i32) {
    %c0_i32 = arith.constant 0 : i32
    %c0_i32_0 = arith.constant 0 : i32
    return %arg1, %arg0, %c0_i32 : i32, i32, i32
  }
  func.func @transform_8(%arg0: i32, %arg1: i32) -> (i32, i32) {
    %c0_i32 = arith.constant 0 : i32
    %c0_i32_0 = arith.constant 0 : i32
    return %arg0, %c0_i32 : i32, i32
  }
  func.func @transform_9(%arg0: i32, %arg1: i32) -> (i32, i32) {
    %c0_i32 = arith.constant 0 : i32
    %c0_i32_0 = arith.constant 0 : i32
    return %arg0, %c0_i32 : i32, i32
  }
}

</mosaic_0001>

<bundles_post_ra>
// kernel: _cll_dense_impl.1
= control target key start
LH: loop header
LB: loop body
LE: loop exit
PB: predicated region body
PF: predicated region fallthrough
CT: control target
= control target key end

     0   :  { %s1602_s3 = inlined_call_operand.vmem [shape: bf16[128,128], index: 3, kind: input, shape index: {}]   ;;  %s1603_s1 = inlined_call_operand.vmem [shape: f32[16,128], index: 1, kind: input, shape index: {}, may-alias: {1,8}]   ;;  %s1604_s0 = inlined_call_operand.vmem [shape: bf16[10,16,128], index: 0, kind: input, shape index: {}]   ;;  %s1605_s2 = inlined_call_operand.vmem [shape: f32[16,128], index: 2, kind: input, shape index: {}, may-alias: {2,9}]   ;;  %s1606_s8 = inlined_call_operand.vmem [shape: f32[16,128], index: 8, kind: output, shape index: {3}, may-alias: {1,8}]   ;;  %s1607_s9 = inlined_call_operand.vmem [shape: f32[16,128], index: 9, kind: output, shape index: {4}, may-alias: {2,9}]   ;;  %s1608_s4 = inlined_call_operand.vmem [shape: f32[1,128], index: 4, kind: input, shape index: {}]   ;;  %s1609_s7 = inlined_call_operand.vmem [shape: f32[10,16,128], index: 7, kind: output, shape index: {2}]   ;;  %s1610_s5 = inlined_call_operand.vmem [shape: bf16[10,16,128], index: 5, kind: output, shape index: {0}]   ;;  %s1611_s6 = inlined_call_operand.vmem [shape: bf16[10,16,128], index: 6, kind: output, shape index: {1}]  }
   0x1   :  { %v1214_v0 = vld [vmem:[%s1602_s3] sm:$0xff]   ;;  %v1215_v1 = vld [vmem:[%s1602_s3 + $0x8] sm:$0xff]   ;;  %v1216_v2 = vld [vmem:[%s1602_s3 + $0x10] sm:$0xff]  }
   0x2   :  { %1161 = vmatprep.subr.bf16.mxu0 %v1214_v0  ;;  %1197 = vmatprep.subr.bf16.mxu1 %v1214_v0  ;;  %v1217_v3 = vld [vmem:[%s1602_s3 + $0x18] sm:$0xff]   ;;  %v30_v4 = vld [vmem:[%s1603_s1] sm:$0xff]  ;;  %v31_v5 = vld [vmem:[%s1603_s1 + $0x8] sm:$0xff] }
   0x3   :  { %1162 = vmatpush3.bf16.msra.mxu0 %v1214_v0  ;;  %1205 = vmatpush3.bf16.msra.mxu1 %v1214_v0  ;;  %v34_v6 = vld [vmem:[%s1605_s2] sm:$0xff]  ;;  %v35_v8 = vld [vmem:[%s1605_s2 + $0x8] sm:$0xff]  ;;  %v48_v11 = vmul.f32 0.85, %v30_v4  ;;  %v49_v12 = vmul.f32 0.85, %v31_v5 }
   0x4   :  { %1163 = vmatprep.subr.bf16.mxu0 %v1215_v1  ;;  %1198 = vmatprep.subr.bf16.mxu1 %v1215_v1  ;;  %v997_v7 = vld [vmem:[%s1604_s0] sm:$0xff]   ;;  %v1116_v13 = vld [vmem:[%s1604_s0 + $0x8] sm:$0xff]   ;;  %v1117_v19 = vld [vmem:[%s1604_s0 + $0x10] sm:$0xff]   ;;  %v52_v20 = vmul.f32 0.9, %v34_v6 }
   0x5   :  { %v998_v9 = vunpack.c.l.bf16 %v997_v7  ;;  %v999_v10 = vunpack.c.h.bf16 %v997_v7  ;;  %v1002_v14 = vunpack.c.l.bf16 %v1116_v13  ;;  %v1003_v15 = vunpack.c.h.bf16 %v1116_v13  ;;  %v1218_v16 = vld [vmem:[%s1602_s3 + $0x20] sm:$0xff]   ;;  %v1219_v26 = vld [vmem:[%s1602_s3 + $0x28] sm:$0xff]   ;;  %v1118_v29 = vld [vmem:[%s1604_s0 + $0x18] sm:$0xff]  }
   0x6   :  { %v53_v21 = vmul.f32 0.9, %v35_v8  ;;  %v1006_v27 = vunpack.c.l.bf16 %v1117_v19  ;;  %v1007_v28 = vunpack.c.h.bf16 %v1117_v19  ;;  %v1220_v38 = vld [vmem:[%s1602_s3 + $0x30] sm:$0xff]   ;;  %v1010_v41 = vunpack.c.l.bf16 %v1118_v29  ;;  %v1119_v47 = vld [vmem:[%s1604_s0 + $0x20] sm:$0xff]   ;;  %v1221_v52 = vld [vmem:[%s1602_s3 + $0x38] sm:$0xff]  }
   0x7   :  { %1164 = vmatpush3.bf16.msra.mxu0 %v1215_v1  ;;  %1206 = vmatpush3.bf16.msra.mxu1 %v1215_v1  ;;  %v46_v17 = vmul.f32 6.6666665, %v998_v9  ;;  %v47_v18 = vmul.f32 6.6666665, %v999_v10  ;;  %v65_v24 = vmul.f32 6.6666665, %v1002_v14  ;;  %v1011_v42 = vunpack.c.h.bf16 %v1118_v29 }
   0x8   :  { %1165 = vmatprep.subr.bf16.mxu0 %v1216_v2  ;;  %1199 = vmatprep.subr.bf16.mxu1 %v1216_v2  ;;  %v66_v25 = vmul.f32 6.6666665, %v1003_v15  ;;  %v84_v39 = vmul.f32 6.6666665, %v1006_v27  ;;  %v85_v40 = vmul.f32 6.6666665, %v1007_v28  ;;  %v1014_v56 = vunpack.c.l.bf16 %v1119_v47 }
   0x9   :  { %v50_v22 = vadd.f32 %v48_v11, %v46_v17  ;;  %v51_v23 = vadd.f32 %v49_v12, %v47_v18  ;;  %v103_v58 = vmul.f32 6.6666665, %v1010_v41  ;;  %v104_v59 = vmul.f32 6.6666665, %v1011_v42  ;;  %v1120_v0 = vld [vmem:[%s1604_s0 + $0x28] sm:$0xff]   ;;  %v1121_v10 = vld [vmem:[%s1604_s0 + $0x30] sm:$0xff]  }
   0xa   :  { %v1015_v60 = vunpack.c.h.bf16 %v1119_v47  ;;  %v122_v5 = vmul.f32 6.6666665, %v1014_v56  ;;  %v1018_v9 = vunpack.c.l.bf16 %v1120_v0  ;;  %v1019_v14 = vunpack.c.h.bf16 %v1120_v0 }
   0xb   :  { %1166 = vmatpush3.bf16.msra.mxu0 %v1216_v2  ;;  %1207 = vmatpush3.bf16.msra.mxu1 %v1216_v2  ;;  %v54_v30 = vmul.f32 10.0, %v50_v22  ;;  %v55_v31 = vmul.f32 10.0, %v51_v23  ;;  %v67_v32 = vmul.f32 0.85, %v50_v22  ;;  %v68_v33 = vmul.f32 0.85, %v51_v23 }
   0xc   :  { %1167 = vmatprep.subr.bf16.mxu0 %v1217_v3  ;;  %1200 = vmatprep.subr.bf16.mxu1 %v1217_v3  ;;  %v123_v8 = vmul.f32 6.6666665, %v1015_v60 }
   0xd   :  { %v56_v34 = vadd.f32 %v54_v30, %v52_v20  ;;  %v57_v35 = vadd.f32 %v55_v31, %v53_v21  ;;  %v69_v36 = vadd.f32 %v67_v32, %v65_v24  ;;  %v70_v37 = vadd.f32 %v68_v33, %v66_v25  ;;  %v1122_v31 = vld [vmem:[%s1604_s0 + $0x38] sm:$0xff]  }
   0xe   :  { %v1022_v20 = vunpack.c.l.bf16 %v1121_v10  ;;  %v141_v25 = vmul.f32 6.6666665, %v1018_v9  ;;  %v1023_v30 = vunpack.c.h.bf16 %v1121_v10 }
   0xf   :  { %1168 = vmatpush3.bf16.msra.mxu0 %v1217_v3  ;;  %1208 = vmatpush3.bf16.msra.mxu1 %v1217_v3  ;;  %v58_v43 = vpack.c.bf16 %v57_v35, %v56_v34  ;;  %v71_v44 = vmul.f32 0.9, %v56_v34  ;;  %v72_v45 = vmul.f32 0.9, %v57_v35  ;;  %v73_v46 = vmul.f32 10.0, %v69_v36 }
  0x10   :  { %1169 = vmatprep.subr.bf16.mxu0 %v1218_v16  ;;  %1201 = vmatprep.subr.bf16.mxu1 %v1218_v16  ;;  %v74_v48 = vmul.f32 10.0, %v70_v37  ;;  %v86_v49 = vmul.f32 0.85, %v69_v36  ;;  %v87_v50 = vmul.f32 0.85, %v70_v37 }
  0x11   :  { %1177 = vmatprep.mubr.bf16.mxu0 %v58_v43  ;;  %v75_v51 = vadd.f32 %v73_v46, %v71_v44  ;;  %v160_v36 = vmul.f32 6.6666665, %v1022_v20  ;;  %v161_v43 = vmul.f32 6.6666665, %v1023_v30  ;;  %v1027_v44 = vunpack.c.h.bf16 %v1122_v31 }
  0x12   :  { %v76_v53 = vadd.f32 %v74_v48, %v72_v45  ;;  %v88_v54 = vadd.f32 %v86_v49, %v84_v39  ;;  %v89_v55 = vadd.f32 %v87_v50, %v85_v40  ;;  %v1026_v40 = vunpack.c.l.bf16 %v1122_v31  ;;  %v1123_v45 = vld [vmem:[%s1604_s0 + $0x40] sm:$0xff]  }
  0x13   :  { %1170 = vmatpush3.bf16.msra.mxu0 %v1218_v16  ;;  %1209 = vmatpush3.bf16.msra.mxu1 %v1218_v16  ;;  %v90_v57 = vmul.f32 0.9, %v75_v51 }
  0x14   :  { %1171 = vmatprep.subr.bf16.mxu0 %v1219_v26  ;;  %1202 = vmatprep.subr.bf16.mxu1 %v1219_v26  ;;  %v91_v61 = vmul.f32 0.9, %v76_v53  ;;  %v92_v62 = vmul.f32 10.0, %v88_v54  ;;  %v93_v63 = vmul.f32 10.0, %v89_v55  ;;  %v105_v1 = vmul.f32 0.85, %v88_v54 }
  0x15   :  { %v106_v2 = vmul.f32 0.85, %v89_v55  ;;  %v77_v11 = vpack.c.bf16 %v76_v53, %v75_v51  ;;  %v1030_v55 = vunpack.c.l.bf16 %v1123_v45 }
  0x16   :  { %v94_v3 = vadd.f32 %v92_v62, %v90_v57  ;;  %v95_v4 = vadd.f32 %v93_v63, %v91_v61  ;;  %v107_v6 = vadd.f32 %v105_v1, %v103_v58  ;;  %v179_v57 = vmul.f32 6.6666665, %v1026_v40 }
  0x17   :  { %1172 = vmatpush3.bf16.msra.mxu0 %v1219_v26  ;;  %1210 = vmatpush3.bf16.msra.mxu1 %v1219_v26  ;;  %v108_v7 = vadd.f32 %v106_v2, %v104_v59  ;;  %v142_v26 = vmul.f32 6.6666665, %v1019_v14  ;;  %v180_v58 = vmul.f32 6.6666665, %v1027_v44  ;;  %v1031_v62 = vunpack.c.h.bf16 %v1123_v45  ;;  %v1124_v2 = vld [vmem:[%s1604_s0 + $0x48] sm:$0xff]  }
  0x18   :  { %1173 = vmatprep.subr.bf16.mxu0 %v1220_v38  ;;  %1203 = vmatprep.subr.bf16.mxu1 %v1220_v38  ;;  %v109_v12 = vmul.f32 0.9, %v94_v3  ;;  %v110_v13 = vmul.f32 0.9, %v95_v4  ;;  %v111_v15 = vmul.f32 10.0, %v107_v6  ;;  %v96_v19 = vpack.c.bf16 %v95_v4, %v94_v3 }
  0x19   :  { %v112_v16 = vmul.f32 10.0, %v108_v7  ;;  %v124_v17 = vmul.f32 0.85, %v107_v6  ;;  %v125_v18 = vmul.f32 0.85, %v108_v7 }
  0x1a   :  { %v113_v21 = vadd.f32 %v111_v15, %v109_v12  ;;  %v198_v4 = vmul.f32 6.6666665, %v1030_v55  ;;  %v199_v10 = vmul.f32 6.6666665, %v1031_v62  ;;  %v1035_v12 = vunpack.c.h.bf16 %v1124_v2  ;;  %v1434_v44 = vld [vmem:[%s1608_s4] ss:$0 sm:$0xff] }
  0x1b   :  { %1174 = vmatpush3.bf16.msra.mxu0 %v1220_v38  ;;  %1211 = vmatpush3.bf16.msra.mxu1 %v1220_v38  ;;  %v114_v22 = vadd.f32 %v112_v16, %v110_v13  ;;  %v126_v23 = vadd.f32 %v124_v17, %v122_v5  ;;  %v127_v24 = vadd.f32 %v125_v18, %v123_v8  ;;  %v1302_v55 = vmov 0.0  }
  0x1c   :  { %1175 = vmatprep.subr.bf16.mxu0 %v1221_v52  ;;  %1204 = vmatprep.subr.bf16.mxu1 %v1221_v52  ;;  %v128_v27 = vmul.f32 0.9, %v113_v21 }
  0x1d   :  { %v129_v28 = vmul.f32 0.9, %v114_v22  ;;  %v130_v29 = vmul.f32 10.0, %v126_v23  ;;  %v131_v32 = vmul.f32 10.0, %v127_v24  ;;  %v143_v33 = vmul.f32 0.85, %v126_v23 }
  0x1e   :  { %v144_v34 = vmul.f32 0.85, %v127_v24  ;;  %v115_v41 = vpack.c.bf16 %v114_v22, %v113_v21  ;;  %v218_v24 = vmul.f32 6.6666665, %v1035_v12 }
  0x1f   :  { %1176 = vmatpush3.bf16.msra.mxu0 %v1221_v52  ;;  %1212 = vmatpush3.bf16.msra.mxu1 %v1221_v52  ;;  %v132_v35 = vadd.f32 %v130_v29, %v128_v27  ;;  %v133_v37 = vadd.f32 %v131_v32, %v129_v28  ;;  %v145_v38 = vadd.f32 %v143_v33, %v141_v25 }
  0x20   :  { %v146_v39 = vadd.f32 %v144_v34, %v142_v26 }
  0x21   :  { %v147_v42 = vmul.f32 0.9, %v132_v35  ;;  %v148_v46 = vmul.f32 0.9, %v133_v37  ;;  %v149_v47 = vmul.f32 10.0, %v145_v38  ;;  %v134_v51 = vpack.c.bf16 %v133_v37, %v132_v35 }
  0x22   :  { %1178 = vmatmul.mubr.bf16.vlgmr.msra.gmra.mrb[0].mxu0 %v77_v11  ;;  %v150_v48 = vmul.f32 10.0, %v146_v39  ;;  %v162_v49 = vmul.f32 0.85, %v145_v38  ;;  %v163_v50 = vmul.f32 0.85, %v146_v39  ;;  %v1034_v11 = vunpack.c.l.bf16 %v1124_v2 }
  0x23   :  { %1181 = vmatprep.mubr.bf16.mxu0 %v96_v19  ;;  %v151_v52 = vadd.f32 %v149_v47, %v147_v42 }
  0x24   :  { %v152_v53 = vadd.f32 %v150_v48, %v148_v46  ;;  %v164_v54 = vadd.f32 %v162_v49, %v160_v36  ;;  %v165_v56 = vadd.f32 %v163_v50, %v161_v43  ;;  %v217_v23 = vmul.f32 6.6666665, %v1034_v11 }
  0x25   :  { %v166_v59 = vmul.f32 0.9, %v151_v52 }
  0x26   :  { %v167_v60 = vmul.f32 0.9, %v152_v53  ;;  %v168_v61 = vmul.f32 10.0, %v164_v54  ;;  %v169_v63 = vmul.f32 10.0, %v165_v56  ;;  %v181_v0 = vmul.f32 0.85, %v164_v54 }
  0x27   :  { %v182_v1 = vmul.f32 0.85, %v165_v56  ;;  %v153_v8 = vpack.c.bf16 %v152_v53, %v151_v52 }
  0x28   :  { %v170_v3 = vadd.f32 %v168_v61, %v166_v59  ;;  %v171_v5 = vadd.f32 %v169_v63, %v167_v60  ;;  %v183_v6 = vadd.f32 %v181_v0, %v179_v57 }
  0x29   :  { %v184_v7 = vadd.f32 %v182_v1, %v180_v58 }
  0x2a   :  { %1182 = vmatmul.mubr.bf16.gmra.mrb[4].mxu0 %v115_v41  ;;  %v185_v9 = vmul.f32 0.9, %v170_v3  ;;  %v172_v13 = vpack.c.bf16 %v171_v5, %v170_v3  ;;  %v186_v14 = vmul.f32 0.9, %v171_v5  ;;  %v187_v15 = vmul.f32 10.0, %v183_v6 }
  0x2b   :  { %1185 = vmatprep.mubr.bf16.mxu0 %v134_v51  ;;  %v188_v16 = vmul.f32 10.0, %v184_v7  ;;  %v200_v17 = vmul.f32 0.85, %v183_v6  ;;  %v201_v18 = vmul.f32 0.85, %v184_v7 }
  0x2c   :  { %1189 = vmatprep.mubr.bf16.mxu1 %v172_v13  ;;  %v189_v19 = vadd.f32 %v187_v15, %v185_v9 }
  0x2d   :  { %v190_v20 = vadd.f32 %v188_v16, %v186_v14  ;;  %v202_v21 = vadd.f32 %v200_v17, %v198_v4  ;;  %v203_v22 = vadd.f32 %v201_v18, %v199_v10 }
  0x2e   :  { %v204_v26 = vmul.f32 0.9, %v189_v19 }
  0x2f   :  { %v191_v25 = vpack.c.bf16 %v190_v20, %v189_v19  ;;  %v205_v27 = vmul.f32 0.9, %v190_v20  ;;  %v206_v28 = vmul.f32 10.0, %v202_v21  ;;  %v207_v29 = vmul.f32 10.0, %v203_v22 }
  0x30   :  { %v219_v30 = vmul.f32 0.85, %v202_v21  ;;  %v220_v31 = vmul.f32 0.85, %v203_v22 }
  0x31   :  { %1190 = vmatmul.mubr.bf16.vlgmr.msra.gmra.mrb[0].mxu1 %v191_v25  ;;  %v208_v32 = vadd.f32 %v206_v28, %v204_v26  ;;  %v209_v33 = vadd.f32 %v207_v29, %v205_v27 }
  0x32   :  { %1186 = vmatmul.mubr.bf16.gmra.mrb[8].mxu0 %v153_v8  ;;  %v221_v34 = vadd.f32 %v219_v30, %v217_v23  ;;  %v222_v35 = vadd.f32 %v220_v31, %v218_v24 }
  0x33   :  { %v210_v36 = vpack.c.bf16 %v209_v33, %v208_v32  ;;  %v223_v37 = vmul.f32 0.9, %v208_v32  ;;  %v224_v38 = vmul.f32 0.9, %v209_v33 }
  0x34   :  { %v225_v39 = vmul.f32 10.0, %v221_v34  ;;  %231 = vst [vmem:[%s1606_s8] sm:$0xff] %v221_v34  ;;  %232 = vst [vmem:[%s1606_s8 + $0x8] sm:$0xff] %v222_v35  ;;  %v226_v40 = vmul.f32 10.0, %v222_v35 }
  0x35   :  { %1193 = vmatprep.mubr.bf16.mxu1 %v210_v36 }
  0x36   :  { %v227_v41 = vadd.f32 %v225_v39, %v223_v37  ;;  %v228_v42 = vadd.f32 %v226_v40, %v224_v38 }
  0x38   :  { %233 = vst [vmem:[%s1607_s9] sm:$0xff] %v227_v41  ;;  %v229_v43 = vpack.c.bf16 %v228_v42, %v227_v41  ;;  %234 = vst [vmem:[%s1607_s9 + $0x8] sm:$0xff] %v228_v42 }
  0x3a   :  { %1194 = vmatmul.mubr.bf16.gmra.mrb[4].mxu1 %v229_v43 }
  0xf5   :  { %v1179_v45 = vpop.f32.mrb[0].mxu0 }
  0xf6   :  { %v359_v46 = vadd.f32 %v1179_v45, %v1434_v44  ;;  %v350_v47 = vpop.f32.mrb[1].mxu0 }
  0xf7   :  { %v351_v48 = vadd.f32 %v1434_v44, %v350_v47  ;;  %v1180_v49 = vpop.f32.mrb[2].mxu0 }
  0xf8   :  { %431 = vst [vmem:[%s1609_s7 + $0x10] sm:$0xff] %v359_v46  ;;  %v878_v50 = vmul.f32 -1.442695, %v359_v46  ;;  %vm671_vm0 = vcmp.gt.f32.partialorder %v359_v46, 0.0  ;;  %v362_v51 = vadd.f32 %v1180_v49, %v1434_v44  ;;  %v353_v52 = vpop.f32.mrb[3].mxu0 }
  0xf9   :  { %429 = vst [vmem:[%s1609_s7] sm:$0xff] %v351_v48  ;;  %v876_v53 = vmul.f32 -1.442695, %v351_v48  ;;  %vm669_vm1 = vcmp.gt.f32.partialorder %v351_v48, 0.0  ;;  %v354_v54 = vadd.f32 %v1434_v44, %v353_v52  ;;  %v918_v56 = vsel %vm671_vm0, 1.0, %v1302_v55 }
  0xfa   :  { %1222 = vpow2.f32 %v878_v50  ;;  %432 = vst [vmem:[%s1609_s7 + $0x18] sm:$0xff] %v362_v51  ;;  %v879_v57 = vmul.f32 -1.442695, %v362_v51  ;;  %vm672_vm2 = vcmp.gt.f32.partialorder %v362_v51, 0.0  ;;  %v916_v60 = vsel %vm669_vm1, 1.0, %v1302_v55 }
  0xfb   :  { %1224 = vpow2.f32 %v876_v53  ;;  %v919_v58 = vsel %vm672_vm2, 1.0, %v1302_v55  ;;  %430 = vst [vmem:[%s1609_s7 + $0x8] sm:$0xff] %v354_v54  ;;  %v877_v59 = vmul.f32 -1.442695, %v354_v54  ;;  %vm670_vm3 = vcmp.gt.f32.partialorder %v354_v54, 0.0 }
  0xfc   :  { %1226 = vpow2.f32 %v879_v57  ;;  %v1090_v61 = vpack.c.bf16 %v919_v58, %v918_v56  ;;  %v917_v62 = vsel %vm670_vm3, 1.0, %v1302_v55 }
  0xfd   :  { %1228 = vpow2.f32 %v877_v59  ;;  %v1087_v63 = vpack.c.bf16 %v917_v62, %v916_v60  ;;  %v1183_v0 = vpop.f32.mrb[4].mxu0 }
  0xfe   :  { %1134 = vst [vmem:[%s1610_s5 + $0x8] sm:$0xff] %v1090_v61   ;;  %v375_v1 = vadd.f32 %v1183_v0, %v1434_v44  ;;  %v366_v2 = vpop.f32.mrb[5].mxu0 }
  0xff   :  { %1088 = vst [vmem:[%s1610_s5] sm:$0xff] %v1087_v63   ;;  %v367_v3 = vadd.f32 %v1434_v44, %v366_v2  ;;  %v1184_v4 = vpop.f32.mrb[6].mxu0 }
 0x100   :  { %435 = vst [vmem:[%s1609_s7 + $0x30] sm:$0xff] %v375_v1  ;;  %v882_v5 = vmul.f32 -1.442695, %v375_v1  ;;  %vm675_vm4 = vcmp.gt.f32.partialorder %v375_v1, 0.0  ;;  %v378_v6 = vadd.f32 %v1184_v4, %v1434_v44  ;;  %v369_v7 = vpop.f32.mrb[7].mxu0 }
 0x101   :  { %433 = vst [vmem:[%s1609_s7 + $0x20] sm:$0xff] %v367_v3  ;;  %v880_v8 = vmul.f32 -1.442695, %v367_v3  ;;  %vm673_vm5 = vcmp.gt.f32.partialorder %v367_v3, 0.0  ;;  %v370_v9 = vadd.f32 %v1434_v44, %v369_v7  ;;  %v922_v10 = vsel %vm675_vm4, 1.0, %v1302_v55 }
 0x102   :  { %1230 = vpow2.f32 %v882_v5  ;;  %436 = vst [vmem:[%s1609_s7 + $0x38] sm:$0xff] %v378_v6  ;;  %v883_v11 = vmul.f32 -1.442695, %v378_v6  ;;  %vm676_vm6 = vcmp.gt.f32.partialorder %v378_v6, 0.0  ;;  %v920_v15 = vsel %vm673_vm5, 1.0, %v1302_v55 }
 0x103   :  { %1232 = vpow2.f32 %v880_v8  ;;  %v923_v12 = vsel %vm676_vm6, 1.0, %v1302_v55  ;;  %434 = vst [vmem:[%s1609_s7 + $0x28] sm:$0xff] %v370_v9  ;;  %v881_v13 = vmul.f32 -1.442695, %v370_v9  ;;  %vm674_vm7 = vcmp.gt.f32.partialorder %v370_v9, 0.0 }
 0x104   :  { %v1223_v14 = vpop.eup %1222  ;;  %1234 = vpow2.f32 %v883_v11  ;;  %v1096_v16 = vpack.c.bf16 %v923_v12, %v922_v10  ;;  %v921_v17 = vsel %vm674_vm7, 1.0, %v1302_v55  ;;  %v1191_v33 = vpop.f32.mrb[0].mxu1 }
 0x105   :  { %v1225_v18 = vpop.eup %1224  ;;  %v511_v19 = vadd.f32 1.0, %v1223_v14  ;;  %1236 = vpow2.f32 %v881_v13  ;;  %v1093_v20 = vpack.c.bf16 %v921_v17, %v920_v15  ;;  %v1187_v21 = vpop.f32.mrb[8].mxu0  ;;  %v407_v35 = vadd.f32 %v1191_v33, %v1434_v44 }
 0x106   :  { %v1227_v22 = vpop.eup %1226  ;;  %v509_v23 = vadd.f32 1.0, %v1225_v18  ;;  %1136 = vst [vmem:[%s1610_s5 + $0x18] sm:$0xff] %v1096_v16   ;;  %v391_v24 = vadd.f32 %v1187_v21, %v1434_v44  ;;  %v382_v25 = vpop.f32.mrb[9].mxu0 }
 0x107   :  { %v1229_v26 = vpop.eup %1228  ;;  %1238 = vrcp.f32 %v511_v19  ;;  %v512_v27 = vadd.f32 1.0, %v1227_v22  ;;  %1135 = vst [vmem:[%s1610_s5 + $0x10] sm:$0xff] %v1093_v20   ;;  %v383_v28 = vadd.f32 %v1434_v44, %v382_v25  ;;  %v1188_v29 = vpop.f32.mrb[10].mxu0  ;;  %443 = vst [vmem:[%s1609_s7 + $0x70] sm:$0xff] %v407_v35  ;;  %v890_v45 = vmul.f32 -1.442695, %v407_v35 }
 0x108   :  { %1240 = vrcp.f32 %v509_v23  ;;  %v510_v30 = vadd.f32 1.0, %v1229_v26  ;;  %439 = vst [vmem:[%s1609_s7 + $0x50] sm:$0xff] %v391_v24  ;;  %v886_v31 = vmul.f32 -1.442695, %v391_v24  ;;  %vm679_vm8 = vcmp.gt.f32.partialorder %v391_v24, 0.0  ;;  %v385_v32 = vpop.f32.mrb[11].mxu0 }
 0x109   :  { %1242 = vrcp.f32 %v512_v27  ;;  %437 = vst [vmem:[%s1609_s7 + $0x40] sm:$0xff] %v383_v28  ;;  %v884_v34 = vmul.f32 -1.442695, %v383_v28  ;;  %vm677_vm9 = vcmp.gt.f32.partialorder %v383_v28, 0.0  ;;  %v398_v36 = vpop.f32.mrb[1].mxu1  ;;  %v1498_v37 = vsel %vm679_vm8, 1.0, %v1302_v55 }
 0x10a   :  { %1244 = vrcp.f32 %v510_v30  ;;  %v394_v38 = vadd.f32 %v1188_v29, %v1434_v44  ;;  %v399_v39 = vadd.f32 %v1434_v44, %v398_v36  ;;  %v1192_v40 = vpop.f32.mrb[2].mxu1  ;;  %v1503_v41 = vsel %vm677_vm9, 1.0, %v1302_v55 }
 0x10b   :  { %1246 = vpow2.f32 %v886_v31  ;;  %v386_v42 = vadd.f32 %v1434_v44, %v385_v32  ;;  %vm683_vm10 = vcmp.gt.f32.partialorder %v407_v35, 0.0  ;;  %v410_v46 = vadd.f32 %v1192_v40, %v1434_v44  ;;  %v401_v47 = vpop.f32.mrb[3].mxu1 }
 0x10c   :  { %v1231_v43 = vpop.eup %1230  ;;  %1248 = vpow2.f32 %v884_v34  ;;  %440 = vst [vmem:[%s1609_s7 + $0x58] sm:$0xff] %v394_v38  ;;  %v930_v50 = vsel %vm683_vm10, 1.0, %v1302_v55  ;;  %441 = vst [vmem:[%s1609_s7 + $0x60] sm:$0xff] %v399_v39  ;;  %v888_v51 = vmul.f32 -1.442695, %v399_v39  ;;  %vm681_vm11 = vcmp.gt.f32.partialorder %v399_v39, 0.0 }
 0x10d   :  { %v1233_v48 = vpop.eup %1232  ;;  %v515_v49 = vadd.f32 1.0, %v1231_v43  ;;  %438 = vst [vmem:[%s1609_s7 + $0x48] sm:$0xff] %v386_v42  ;;  %1250 = vpow2.f32 %v890_v45  ;;  %v928_v54 = vsel %vm681_vm11, 1.0, %v1302_v55  ;;  %444 = vst [vmem:[%s1609_s7 + $0x78] sm:$0xff] %v410_v46  ;;  %v891_v56 = vmul.f32 -1.442695, %v410_v46 }
 0x10e   :  { %v1235_v52 = vpop.eup %1234  ;;  %v513_v53 = vadd.f32 1.0, %v1233_v48  ;;  %vm684_vm12 = vcmp.gt.f32.partialorder %v410_v46, 0.0  ;;  %v402_v59 = vadd.f32 %v1434_v44, %v401_v47  ;;  %v887_v62 = vmul.f32 -1.442695, %v394_v38  ;;  %v1195_v8 = vpop.f32.mrb[4].mxu1 }
 0x10f   :  { %v1237_v57 = vpop.eup %1236  ;;  %1252 = vrcp.f32 %v515_v49  ;;  %v516_v58 = vadd.f32 1.0, %v1235_v52  ;;  %v931_v61 = vsel %vm684_vm12, 1.0, %v1302_v55  ;;  %vm680_vm14 = vcmp.gt.f32.partialorder %v394_v38, 0.0  ;;  %v414_v13 = vpop.f32.mrb[5].mxu1 }
 0x110   :  { %1254 = vrcp.f32 %v513_v53  ;;  %v514_v60 = vadd.f32 1.0, %v1237_v57  ;;  %v1108_v0 = vpack.c.bf16 %v931_v61, %v930_v50  ;;  %442 = vst [vmem:[%s1609_s7 + $0x68] sm:$0xff] %v402_v59  ;;  %v889_v1 = vmul.f32 -1.442695, %v402_v59  ;;  %v1196_v18 = vpop.f32.mrb[6].mxu1 }
 0x111   :  { %v1239_v63 = vpop.eup %1238  ;;  %1256 = vrcp.f32 %v516_v58  ;;  %vm682_vm13 = vcmp.gt.f32.partialorder %v402_v59, 0.0  ;;  %v885_v4 = vmul.f32 -1.442695, %v386_v42  ;;  %v927_v7 = vsel %vm680_vm14, 1.0, %v1302_v55  ;;  %v417_v23 = vpop.f32.mrb[7].mxu1 }
 0x112   :  { %v1241_v2 = vpop.eup %1240  ;;  %1258 = vrcp.f32 %v514_v60  ;;  %v929_v3 = vsel %vm682_vm13, 1.0, %v1302_v55  ;;  %1140 = vst [vmem:[%s1610_s5 + $0x38] sm:$0xff] %v1108_v0   ;;  %vm678_vm15 = vcmp.gt.f32.partialorder %v386_v42, 0.0  ;;  %v1102_v11 = vpack.c.bf16 %v927_v7, %v1498_v37 }
 0x113   :  { %v1243_v5 = vpop.eup %1242  ;;  %1260 = vpow2.f32 %v888_v51  ;;  %v1105_v6 = vpack.c.bf16 %v929_v3, %v928_v54  ;;  %v925_v12 = vsel %vm678_vm15, 1.0, %v1302_v55  ;;  %v423_v17 = vadd.f32 %v1195_v8, %v1434_v44 }
 0x114   :  { %v1245_v9 = vpop.eup %1244  ;;  %v1044_v10 = vpack.c.bf16 %v1243_v5, %v1239_v63  ;;  %1262 = vpow2.f32 %v891_v56  ;;  %v1099_v16 = vpack.c.bf16 %v925_v12, %v1503_v41  ;;  %1138 = vst [vmem:[%s1610_s5 + $0x28] sm:$0xff] %v1102_v11   ;;  %v415_v21 = vadd.f32 %v1434_v44, %v414_v13 }
 0x115   :  { %v1247_v14 = vpop.eup %1246  ;;  %v1039_v15 = vpack.c.bf16 %v1245_v9, %v1241_v2  ;;  %1264 = vpow2.f32 %v889_v1  ;;  %1139 = vst [vmem:[%s1610_s5 + $0x30] sm:$0xff] %v1105_v6   ;;  %v426_v22 = vadd.f32 %v1196_v18, %v1434_v44  ;;  %447 = vst [vmem:[%s1609_s7 + $0x90] sm:$0xff] %v423_v17  ;;  %v894_v25 = vmul.f32 -1.442695, %v423_v17 }
 0x116   :  { %v1249_v19 = vpop.eup %1248  ;;  %1125 = vst [vmem:[%s1611_s6 + $0x8] sm:$0xff] %v1044_v10   ;;  %v519_v20 = vadd.f32 1.0, %v1247_v14  ;;  %1266 = vpow2.f32 %v887_v62  ;;  %1137 = vst [vmem:[%s1610_s5 + $0x20] sm:$0xff] %v1099_v16   ;;  %vm687_vm0 = vcmp.gt.f32.partialorder %v423_v17, 0.0  ;;  %v892_v27 = vmul.f32 -1.442695, %v415_v21 }
 0x117   :  { %1040 = vst [vmem:[%s1611_s6] sm:$0xff] %v1039_v15   ;;  %v517_v24 = vadd.f32 1.0, %v1249_v19  ;;  %1268 = vpow2.f32 %v885_v4  ;;  %v1251_v26 = vpop.eup %1250  ;;  %445 = vst [vmem:[%s1609_s7 + $0x80] sm:$0xff] %v415_v21  ;;  %v934_v29 = vsel %vm687_vm0, 1.0, %v1302_v55  ;;  %v895_v30 = vmul.f32 -1.442695, %v426_v22 }
 0x118   :  { %448 = vst [vmem:[%s1609_s7 + $0x98] sm:$0xff] %v426_v22  ;;  %1270 = vrcp.f32 %v519_v20  ;;  %vm688_vm1 = vcmp.gt.f32.partialorder %v426_v22, 0.0  ;;  %v418_v32 = vadd.f32 %v1434_v44, %v417_v23  ;;  %v523_v34 = vadd.f32 1.0, %v1251_v26 }
 0x119   :  { %v1253_v28 = vpop.eup %1252  ;;  %1272 = vpow2.f32 %v894_v25  ;;  %vm685_vm2 = vcmp.gt.f32.partialorder %v415_v21, 0.0  ;;  %v935_v35 = vsel %vm688_vm1, 1.0, %v1302_v55 }
 0x11a   :  { %v1255_v31 = vpop.eup %1254  ;;  %1274 = vrcp.f32 %v517_v24  ;;  %v1114_v38 = vpack.c.bf16 %v935_v35, %v934_v29  ;;  %446 = vst [vmem:[%s1609_s7 + $0x88] sm:$0xff] %v418_v32  ;;  %v893_v39 = vmul.f32 -1.442695, %v418_v32  ;;  %vm686_vm3 = vcmp.gt.f32.partialorder %v418_v32, 0.0 }
 0x11b   :  { %v1257_v33 = vpop.eup %1256  ;;  %1276 = vpow2.f32 %v892_v27  ;;  %v932_v43 = vsel %vm685_vm2, 1.0, %v1302_v55  ;;  %v933_v45 = vsel %vm686_vm3, 1.0, %v1302_v55 }
 0x11c   :  { %v1259_v36 = vpop.eup %1258  ;;  %v1054_v37 = vpack.c.bf16 %v1257_v33, %v1253_v28  ;;  %1278 = vpow2.f32 %v895_v30  ;;  %1142 = vst [vmem:[%s1610_s5 + $0x48] sm:$0xff] %v1114_v38   ;;  %v1111_v48 = vpack.c.bf16 %v933_v45, %v932_v43 }
 0x11d   :  { %v1261_v40 = vpop.eup %1260  ;;  %v1049_v41 = vpack.c.bf16 %v1259_v36, %v1255_v31  ;;  %1280 = vpow2.f32 %v893_v39 }
 0x11e   :  { %v1263_v44 = vpop.eup %1262  ;;  %1127 = vst [vmem:[%s1611_s6 + $0x18] sm:$0xff] %v1054_v37   ;;  %v521_v42 = vadd.f32 1.0, %v1261_v40  ;;  %1282 = vrcp.f32 %v523_v34  ;;  %1141 = vst [vmem:[%s1610_s5 + $0x40] sm:$0xff] %v1111_v48  }
 0x11f   :  { %v1265_v46 = vpop.eup %1264  ;;  %1126 = vst [vmem:[%s1611_s6 + $0x10] sm:$0xff] %v1049_v41   ;;  %v524_v47 = vadd.f32 1.0, %v1263_v44 }
 0x120   :  { %v1267_v49 = vpop.eup %1266  ;;  %1284 = vrcp.f32 %v521_v42  ;;  %v522_v50 = vadd.f32 1.0, %v1265_v46 }
 0x121   :  { %v1269_v51 = vpop.eup %1268  ;;  %1286 = vrcp.f32 %v524_v47  ;;  %v520_v52 = vadd.f32 1.0, %v1267_v49 }
 0x122   :  { %1288 = vrcp.f32 %v522_v50  ;;  %v518_v55 = vadd.f32 1.0, %v1269_v51  ;;  %v1271_v53 = vpop.eup %1270 }
 0x123   :  { %1290 = vrcp.f32 %v520_v52  ;;  %v1273_v54 = vpop.eup %1272 }
 0x124   :  { %1292 = vrcp.f32 %v518_v55  ;;  %v1275_v56 = vpop.eup %1274  ;;  %v527_v57 = vadd.f32 1.0, %v1273_v54 }
 0x125   :  { %v1277_v58 = vpop.eup %1276 }
 0x126   :  { %v1279_v59 = vpop.eup %1278  ;;  %v525_v60 = vadd.f32 1.0, %v1277_v58  ;;  %1294 = vrcp.f32 %v527_v57 }
 0x127   :  { %v1281_v61 = vpop.eup %1280  ;;  %v528_v62 = vadd.f32 1.0, %v1279_v59 }
 0x128   :  { %v1283_v63 = vpop.eup %1282  ;;  %1296 = vrcp.f32 %v525_v60  ;;  %v526_v0 = vadd.f32 1.0, %v1281_v61 }
 0x129   :  { %1298 = vrcp.f32 %v528_v62 }
 0x12a   :  { %v1285_v1 = vpop.eup %1284  ;;  %1300 = vrcp.f32 %v526_v0 }
 0x12b   :  { %v1287_v2 = vpop.eup %1286 }
 0x12c   :  { %v1289_v3 = vpop.eup %1288  ;;  %v1074_v4 = vpack.c.bf16 %v1287_v2, %v1283_v63 }
 0x12d   :  { %v1291_v5 = vpop.eup %1290  ;;  %v1069_v6 = vpack.c.bf16 %v1289_v3, %v1285_v1 }
 0x12e   :  { %v1293_v7 = vpop.eup %1292  ;;  %1131 = vst [vmem:[%s1611_s6 + $0x38] sm:$0xff] %v1074_v4   ;;  %v1064_v8 = vpack.c.bf16 %v1291_v5, %v1271_v53 }
 0x12f   :  { %1130 = vst [vmem:[%s1611_s6 + $0x30] sm:$0xff] %v1069_v6   ;;  %v1059_v9 = vpack.c.bf16 %v1293_v7, %v1275_v56 }
 0x130   :  { %1129 = vst [vmem:[%s1611_s6 + $0x28] sm:$0xff] %v1064_v8   ;;  %v1295_v10 = vpop.eup %1294 }
 0x131   :  { %1128 = vst [vmem:[%s1611_s6 + $0x20] sm:$0xff] %v1059_v9  }
 0x132   :  { %v1297_v11 = vpop.eup %1296 }
 0x133   :  { %v1299_v12 = vpop.eup %1298 }
 0x134   :  { %v1301_v13 = vpop.eup %1300  ;;  %v1084_v14 = vpack.c.bf16 %v1299_v12, %v1295_v10 }
 0x135   :  { %v1079_v15 = vpack.c.bf16 %v1301_v13, %v1297_v11 }
 0x136   :  { %1133 = vst [vmem:[%s1611_s6 + $0x48] sm:$0xff] %v1084_v14  }
 0x137   :  { %1132 = vst [vmem:[%s1611_s6 + $0x40] sm:$0xff] %v1079_v15  }

</bundles_post_ra>
